<compile_context>
chip_gen: v6e
topology: v6e:2x2x1
jax: 0.10.0
libtpu: 0.0.40
codegen_flags: <defaults>
</compile_context>

<pallas_src>
import jax
import jax.numpy as jnp
from jax.experimental import pallas as pl
from jax.experimental.pallas import tpu as pltpu

MIN_VALUE = 5.191708258785932    # clamp_min threshold
MAX_VALUE = -5.181125051492283   # clamp_max threshold


def _pick_tile(h_half, cap=1024):
    """Tile (in odd-row units) along H/2: biggest legal tile <= cap."""
    if h_half <= cap:
        return h_half                       # full dim is always a legal block
    best = None
    for t in range(8, cap + 1, 8):          # multiples of 8 (sublane packing)
        if h_half % t == 0:
            best = t
    return best if best is not None else h_half


# ---------------------------------------------------------------------------
# Fused kernel, one (batch, h-tile) grid step:
#   xb  : (8, TH, 128)  channels x odd-row-tiles x (even|odd row pair of 64)
#   v1  = xb @ W1 + b1  with W1 zero on lanes 0..63  -> odd rows, odd features
#   v4  = hardtanh(clamp_max(clamp_min(v1)))
#   out[n] = sum_c w2[c,n] * v4[c] + b2[n]           (VPU channel sum)
# ---------------------------------------------------------------------------
def _fused_kernel(x_ref, w1_ref, b1_ref, w2_ref, b2_ref, o_ref):
    c_in = x_ref.shape[1]                   # 8
    th = x_ref.shape[2]                     # TH odd rows in this tile

    xb = x_ref[0].reshape(c_in * th, 128)   # leading-dim merge (free)
    v1 = jnp.dot(xb, w1_ref[...], preferred_element_type=jnp.float32)
    v1 = v1 + b1_ref[...]                   # (8*TH, 4) + (1, 4)
    v2 = jnp.maximum(v1, MIN_VALUE)         # torch.clamp_min
    v3 = jnp.minimum(v2, MAX_VALUE)         # torch.clamp_max
    v4 = jnp.clip(v3, -1.0, 1.0)            # Hardtanh
    v4 = v4.reshape(c_in, th, 4)            # leading-dim split (free)

    # 1x1 conv channel contraction on the VPU (scalars live in SMEM).
    for n in range(3):
        acc = w2_ref[0, n] * v4[0] + b2_ref[n]
        for c in range(1, c_in):
            acc = acc + w2_ref[c, n] * v4[c]
        o_ref[0, n] = acc                   # (TH, 4) interior rows, NCHW order


# ---------------------------------------------------------------------------
# Full forward pass
# ---------------------------------------------------------------------------
def model_forward(x1, params):
    B, C, H, K = x1.shape
    assert C == 8 and K == 64, "Linear(64->8) -> Conv2d(8->3) needs C=8, K=64"
    assert H % 2 == 0  # TODO(synk): odd H (last interior conv row is pure pad)
    h_half = H // 2

    # Free bitcast: pack (even,odd) row pairs into the 128-wide lane dim.
    xr = x1.reshape(B, C, h_half, 128)

    th = _pick_tile(h_half)
    # Guarantee >=2 grid steps so v7x megacore can shard the grid.
    if B * (h_half // th) < 2 and th % 16 == 0:
        th //= 2
    n_h = h_half // th
    grid = (B, n_h)

    flops = 2 * B * 8 * h_half * 128 * 4 + 2 * B * 3 * h_half * 4 * 8
    bytes_accessed = (xr.size + B * 3 * h_half * 4 + 128 * 4 + 4 + 24 + 3) * 4

    interior = pl.pallas_call(
        _fused_kernel,
        out_shape=jax.ShapeDtypeStruct((B, 3, h_half, 4), jnp.float32),
        grid_spec=pltpu.PrefetchScalarGridSpec(
            num_scalar_prefetch=0,
            grid=grid,
            in_specs=[
                pl.BlockSpec((1, 8, th, 128), lambda b, t: (b, 0, t, 0)),  # x
                pl.BlockSpec((128, 4), lambda b, t: (0, 0)),               # W1
                pl.BlockSpec((1, 4), lambda b, t: (0, 0)),                 # b1
                pl.BlockSpec(memory_space=pltpu.MemorySpace.SMEM),         # w2
                pl.BlockSpec(memory_space=pltpu.MemorySpace.SMEM),         # b2
            ],
            out_specs=pl.BlockSpec((1, 3, th, 4), lambda b, t: (b, 0, t, 0)),
        ),
        compiler_params=pltpu.CompilerParams(
            dimension_semantics=("parallel", "parallel")),
        cost_estimate=pl.CostEstimate(
            flops=flops, transcendentals=0, bytes_accessed=bytes_accessed),
    )(xr, params["w1_kern"], params["b1_kern"],
      params["w2_kern"], params["b2_kern"])

    # Assemble the NCHW conv output; border (ho==0 or wo==0) reads padding
    # and therefore equals the conv bias.  Valid for W=8, k=1, stride=2, pad=1.
    Ho = (H + 1) // 2 + 1
    Wo = 5
    conv_b = params["conv_b"]
    v5 = jnp.broadcast_to(conv_b.reshape(1, 3, 1, 1), (B, 3, Ho, Wo))
    v5 = v5.at[:, :, 1:1 + h_half, 1:Wo].set(interior)
    return v5


def init_params(key):
    k1, k2, k3, k4 = jax.random.split(key, 4)
    # Linear(64, 8): PyTorch default init U(-1/sqrt(64), 1/sqrt(64))
    bnd_l = 1.0 / jnp.sqrt(64.0)
    lin_w = jax.random.uniform(k1, (8, 64), jnp.float32, -bnd_l, bnd_l)
    lin_b = jax.random.uniform(k2, (8,), jnp.float32, -bnd_l, bnd_l)
    # Conv2d(8, 3, 1): fan_in = 8
    bnd_c = 1.0 / jnp.sqrt(8.0)
    conv_w = jax.random.uniform(k3, (3, 8, 1, 1), jnp.float32, -bnd_c, bnd_c)
    conv_b = jax.random.uniform(k4, (3,), jnp.float32, -bnd_c, bnd_c)

    lin_w_t = lin_w.T                      # (64, 8)
    conv_w_t = conv_w.reshape(3, 8).T      # (8, 3)

    # Kernel-structured weights, precomputed ONCE (perf-review item):
    #   W1[64+k, i] = lin_w_t[k, 2i+1]  (odd features), lanes 0..63 are zero
    #   -> the matmul itself selects the odd h row packed in lanes 64..127.
    w1 = jnp.zeros((128, 4), jnp.float32).at[64:, :].set(lin_w_t[:, 1::2])
    b1 = lin_b[1::2].reshape(1, 4)

    return {
        # original-layout params (used by the pure-JAX reference)
        "lin_w_t": lin_w_t, "lin_b": lin_b,
        "conv_w_t": conv_w_t, "conv_b": conv_b,
        # kernel-structured params
        "w1_kern": w1, "b1_kern": b1,
        "w2_kern": conv_w_t,   # (8, 3) scalars, SMEM
        "b2_kern": conv_b,     # (3,)  scalars, SMEM
    }


def reference_forward(x1, params):
    v1 = jnp.einsum("bchk,kn->bchn", x1, params["lin_w_t"]) + params["lin_b"]
    v2 = jnp.maximum(v1, MIN_VALUE)
    v3 = jnp.minimum(v2, MAX_VALUE)
    v4 = jnp.clip(v3, -1.0, 1.0)
    v4_pad = jnp.pad(v4, ((0, 0), (0, 0), (1, 1), (1, 1)))
    samp = v4_pad[:, :, ::2, ::2]
    out = jnp.einsum("bchw,cn->bnhw", samp, params["conv_w_t"]) \
        + params["conv_b"][None, :, None, None]
    return out


if __name__ == "__main__":
    key = jax.random.PRNGKey(0)
    kx, kp = jax.random.split(key)

    # Small shape consistent with the forward: (B=2, C=8, H=16, feat=64).
    x1 = jax.random.normal(kx, (2, 8, 16, 64), jnp.float32)
    params = init_params(kp)

    out = jax.jit(model_forward)(x1, params)
    out = jax.block_until_ready(out)

    ref = reference_forward(x1, params)
    assert out.shape == (2, 3, 9, 5), out.shape
    assert jnp.allclose(out, ref, atol=1e-4, rtol=1e-4), \
        float(jnp.max(jnp.abs(out - ref)))

    print("KERNEL_OK")
</pallas_src>

<mosaic_0001>
module attributes {stable_mosaic.version = 11 : i64} {
  func.func @_fused_kernel(%arg0: i32, %arg1: i32, %arg2: memref<1x8x8x128xf32, #tpu.memory_space<vmem>>, %arg3: memref<128x4xf32, #tpu.memory_space<vmem>>, %arg4: memref<1x4xf32, #tpu.memory_space<vmem>>, %arg5: memref<8x3xf32, #tpu.memory_space<smem>>, %arg6: memref<3xf32, #tpu.memory_space<smem>>, %arg7: memref<1x3x8x4xf32, #tpu.memory_space<vmem>>) attributes {dimension_semantics = [#tpu.dimension_semantics<parallel>, #tpu.dimension_semantics<parallel>], iteration_bounds = array<i64: 2, 1>, scalar_prefetch = 0 : i64, scratch_operands = 0 : i64, tpu.core_type = #tpu.core_type<tc>, window_params = [{transform_indices = @transform_0, window_bounds = array<i64: 1, 8, 8, 128>}, {pipeline_mode = #tpu.pipeline_mode<synchronous>, transform_indices = @transform_1, window_bounds = array<i64: 128, 4>}, {pipeline_mode = #tpu.pipeline_mode<synchronous>, transform_indices = @transform_2, window_bounds = array<i64: 1, 4>}, {transform_indices = @transform_3, window_bounds = array<i64: 8, 3>}, {transform_indices = @transform_4, window_bounds = array<i64: 3>}, {transform_indices = @transform_5, window_bounds = array<i64: 1, 3, 8, 4>}]} {
    %c0 = arith.constant 0 : index
    %c0_0 = arith.constant 0 : index
    %c0_1 = arith.constant 0 : index
    %c0_2 = arith.constant 0 : index
    %0 = vector.load %arg2[%c0, %c0_0, %c0_1, %c0_2] : memref<1x8x8x128xf32, #tpu.memory_space<vmem>>, vector<1x8x8x128xf32>
    %1 = vector.shape_cast %0 : vector<1x8x8x128xf32> to vector<8x8x128xf32>
    %2 = vector.shape_cast %1 : vector<8x8x128xf32> to vector<64x128xf32>
    %c0_3 = arith.constant 0 : index
    %c0_4 = arith.constant 0 : index
    %3 = vector.load %arg3[%c0_3, %c0_4] : memref<128x4xf32, #tpu.memory_space<vmem>>, vector<128x4xf32>
    %cst = arith.constant dense<0.000000e+00> : vector<64x4xf32>
    %4 = tpu.matmul %2, %3, %cst {dimension_numbers = #tpu.dot_dimension_numbers<[1], [0], [0], [1], [0, 0, 1, 1], [], []>} : vector<64x128xf32>, vector<128x4xf32>, vector<64x4xf32> -> vector<64x4xf32>
    %c0_5 = arith.constant 0 : index
    %c0_6 = arith.constant 0 : index
    %5 = vector.load %arg4[%c0_5, %c0_6] : memref<1x4xf32, #tpu.memory_space<vmem>>, vector<1x4xf32>
    %6 = vector.broadcast %5 : vector<1x4xf32> to vector<64x4xf32>
    %7 = arith.addf %4, %6 : vector<64x4xf32>
    %cst_7 = arith.constant 5.19170809 : f32
    %8 = vector.broadcast %cst_7 : f32 to vector<64x4xf32>
    %9 = arith.maximumf %7, %8 : vector<64x4xf32>
    %cst_8 = arith.constant -5.18112516 : f32
    %10 = vector.broadcast %cst_8 : f32 to vector<64x4xf32>
    %11 = arith.minimumf %9, %10 : vector<64x4xf32>
    %cst_9 = arith.constant -1.000000e+00 : f32
    %cst_10 = arith.constant 1.000000e+00 : f32
    %12 = vector.broadcast %cst_9 : f32 to vector<64x4xf32>
    %13 = arith.maximumf %12, %11 : vector<64x4xf32>
    %14 = vector.broadcast %cst_10 : f32 to vector<64x4xf32>
    %15 = arith.minimumf %14, %13 : vector<64x4xf32>
    %16 = vector.shape_cast %15 : vector<64x4xf32> to vector<8x8x4xf32>
    %c0_11 = arith.constant 0 : index
    %c0_12 = arith.constant 0 : index
    %17 = memref.load %arg5[%c0_11, %c0_12] : memref<8x3xf32, #tpu.memory_space<smem>>
    %18 = vector.extract_strided_slice %16 {offsets = [0, 0, 0], sizes = [1, 8, 4], strides = [1, 1, 1]} : vector<8x8x4xf32> to vector<1x8x4xf32>
    %19 = vector.shape_cast %18 : vector<1x8x4xf32> to vector<8x4xf32>
    %20 = vector.broadcast %17 : f32 to vector<8x4xf32>
    %21 = arith.mulf %20, %19 : vector<8x4xf32>
    %c0_13 = arith.constant 0 : index
    %22 = memref.load %arg6[%c0_13] : memref<3xf32, #tpu.memory_space<smem>>
    %23 = vector.broadcast %22 : f32 to vector<8x4xf32>
    %24 = arith.addf %21, %23 : vector<8x4xf32>
    %c1 = arith.constant 1 : index
    %c0_14 = arith.constant 0 : index
    %25 = memref.load %arg5[%c1, %c0_14] : memref<8x3xf32, #tpu.memory_space<smem>>
    %26 = vector.extract_strided_slice %16 {offsets = [1, 0, 0], sizes = [1, 8, 4], strides = [1, 1, 1]} : vector<8x8x4xf32> to vector<1x8x4xf32>
    %27 = vector.shape_cast %26 : vector<1x8x4xf32> to vector<8x4xf32>
    %28 = vector.broadcast %25 : f32 to vector<8x4xf32>
    %29 = arith.mulf %28, %27 : vector<8x4xf32>
    %30 = arith.addf %24, %29 : vector<8x4xf32>
    %c2 = arith.constant 2 : index
    %c0_15 = arith.constant 0 : index
    %31 = memref.load %arg5[%c2, %c0_15] : memref<8x3xf32, #tpu.memory_space<smem>>
    %32 = vector.extract_strided_slice %16 {offsets = [2, 0, 0], sizes = [1, 8, 4], strides = [1, 1, 1]} : vector<8x8x4xf32> to vector<1x8x4xf32>
    %33 = vector.shape_cast %32 : vector<1x8x4xf32> to vector<8x4xf32>
    %34 = vector.broadcast %31 : f32 to vector<8x4xf32>
    %35 = arith.mulf %34, %33 : vector<8x4xf32>
    %36 = arith.addf %30, %35 : vector<8x4xf32>
    %c3 = arith.constant 3 : index
    %c0_16 = arith.constant 0 : index
    %37 = memref.load %arg5[%c3, %c0_16] : memref<8x3xf32, #tpu.memory_space<smem>>
    %38 = vector.extract_strided_slice %16 {offsets = [3, 0, 0], sizes = [1, 8, 4], strides = [1, 1, 1]} : vector<8x8x4xf32> to vector<1x8x4xf32>
    %39 = vector.shape_cast %38 : vector<1x8x4xf32> to vector<8x4xf32>
    %40 = vector.broadcast %37 : f32 to vector<8x4xf32>
    %41 = arith.mulf %40, %39 : vector<8x4xf32>
    %42 = arith.addf %36, %41 : vector<8x4xf32>
    %c4 = arith.constant 4 : index
    %c0_17 = arith.constant 0 : index
    %43 = memref.load %arg5[%c4, %c0_17] : memref<8x3xf32, #tpu.memory_space<smem>>
    %44 = vector.extract_strided_slice %16 {offsets = [4, 0, 0], sizes = [1, 8, 4], strides = [1, 1, 1]} : vector<8x8x4xf32> to vector<1x8x4xf32>
    %45 = vector.shape_cast %44 : vector<1x8x4xf32> to vector<8x4xf32>
    %46 = vector.broadcast %43 : f32 to vector<8x4xf32>
    %47 = arith.mulf %46, %45 : vector<8x4xf32>
    %48 = arith.addf %42, %47 : vector<8x4xf32>
    %c5 = arith.constant 5 : index
    %c0_18 = arith.constant 0 : index
    %49 = memref.load %arg5[%c5, %c0_18] : memref<8x3xf32, #tpu.memory_space<smem>>
    %50 = vector.extract_strided_slice %16 {offsets = [5, 0, 0], sizes = [1, 8, 4], strides = [1, 1, 1]} : vector<8x8x4xf32> to vector<1x8x4xf32>
    %51 = vector.shape_cast %50 : vector<1x8x4xf32> to vector<8x4xf32>
    %52 = vector.broadcast %49 : f32 to vector<8x4xf32>
    %53 = arith.mulf %52, %51 : vector<8x4xf32>
    %54 = arith.addf %48, %53 : vector<8x4xf32>
    %c6 = arith.constant 6 : index
    %c0_19 = arith.constant 0 : index
    %55 = memref.load %arg5[%c6, %c0_19] : memref<8x3xf32, #tpu.memory_space<smem>>
    %56 = vector.extract_strided_slice %16 {offsets = [6, 0, 0], sizes = [1, 8, 4], strides = [1, 1, 1]} : vector<8x8x4xf32> to vector<1x8x4xf32>
    %57 = vector.shape_cast %56 : vector<1x8x4xf32> to vector<8x4xf32>
    %58 = vector.broadcast %55 : f32 to vector<8x4xf32>
    %59 = arith.mulf %58, %57 : vector<8x4xf32>
    %60 = arith.addf %54, %59 : vector<8x4xf32>
    %c7 = arith.constant 7 : index
    %c0_20 = arith.constant 0 : index
    %61 = memref.load %arg5[%c7, %c0_20] : memref<8x3xf32, #tpu.memory_space<smem>>
    %62 = vector.extract_strided_slice %16 {offsets = [7, 0, 0], sizes = [1, 8, 4], strides = [1, 1, 1]} : vector<8x8x4xf32> to vector<1x8x4xf32>
    %63 = vector.shape_cast %62 : vector<1x8x4xf32> to vector<8x4xf32>
    %64 = vector.broadcast %61 : f32 to vector<8x4xf32>
    %65 = arith.mulf %64, %63 : vector<8x4xf32>
    %66 = arith.addf %60, %65 : vector<8x4xf32>
    %c0_21 = arith.constant 0 : index
    %c0_22 = arith.constant 0 : index
    %c0_23 = arith.constant 0 : index
    %c0_24 = arith.constant 0 : index
    %67 = vector.load %arg7[%c0_21, %c0_22, %c0_23, %c0_24] : memref<1x3x8x4xf32, #tpu.memory_space<vmem>>, vector<1x1x8x4xf32>
    %68 = vector.shape_cast %67 : vector<1x1x8x4xf32> to vector<8x4xf32>
    %69 = vector.shape_cast %66 : vector<8x4xf32> to vector<1x1x8x4xf32>
    tpu.vector_store %arg7[%c0_21, %c0_22, %c0_23, %c0_24], %69 {strides = array<i32>} : memref<1x3x8x4xf32, #tpu.memory_space<vmem>>, vector<1x1x8x4xf32>,
    %c0_25 = arith.constant 0 : index
    %c1_26 = arith.constant 1 : index
    %70 = memref.load %arg5[%c0_25, %c1_26] : memref<8x3xf32, #tpu.memory_space<smem>>
    %71 = vector.extract_strided_slice %16 {offsets = [0, 0, 0], sizes = [1, 8, 4], strides = [1, 1, 1]} : vector<8x8x4xf32> to vector<1x8x4xf32>
    %72 = vector.shape_cast %71 : vector<1x8x4xf32> to vector<8x4xf32>
    %73 = vector.broadcast %70 : f32 to vector<8x4xf32>
    %74 = arith.mulf %73, %72 : vector<8x4xf32>
    %c1_27 = arith.constant 1 : index
    %75 = memref.load %arg6[%c1_27] : memref<3xf32, #tpu.memory_space<smem>>
    %76 = vector.broadcast %75 : f32 to vector<8x4xf32>
    %77 = arith.addf %74, %76 : vector<8x4xf32>
    %c1_28 = arith.constant 1 : index
    %c1_29 = arith.constant 1 : index
    %78 = memref.load %arg5[%c1_28, %c1_29] : memref<8x3xf32, #tpu.memory_space<smem>>
    %79 = vector.extract_strided_slice %16 {offsets = [1, 0, 0], sizes = [1, 8, 4], strides = [1, 1, 1]} : vector<8x8x4xf32> to vector<1x8x4xf32>
    %80 = vector.shape_cast %79 : vector<1x8x4xf32> to vector<8x4xf32>
    %81 = vector.broadcast %78 : f32 to vector<8x4xf32>
    %82 = arith.mulf %81, %80 : vector<8x4xf32>
    %83 = arith.addf %77, %82 : vector<8x4xf32>
    %c2_30 = arith.constant 2 : index
    %c1_31 = arith.constant 1 : index
    %84 = memref.load %arg5[%c2_30, %c1_31] : memref<8x3xf32, #tpu.memory_space<smem>>
    %85 = vector.extract_strided_slice %16 {offsets = [2, 0, 0], sizes = [1, 8, 4], strides = [1, 1, 1]} : vector<8x8x4xf32> to vector<1x8x4xf32>
    %86 = vector.shape_cast %85 : vector<1x8x4xf32> to vector<8x4xf32>
    %87 = vector.broadcast %84 : f32 to vector<8x4xf32>
    %88 = arith.mulf %87, %86 : vector<8x4xf32>
    %89 = arith.addf %83, %88 : vector<8x4xf32>
    %c3_32 = arith.constant 3 : index
    %c1_33 = arith.constant 1 : index
    %90 = memref.load %arg5[%c3_32, %c1_33] : memref<8x3xf32, #tpu.memory_space<smem>>
    %91 = vector.extract_strided_slice %16 {offsets = [3, 0, 0], sizes = [1, 8, 4], strides = [1, 1, 1]} : vector<8x8x4xf32> to vector<1x8x4xf32>
    %92 = vector.shape_cast %91 : vector<1x8x4xf32> to vector<8x4xf32>
    %93 = vector.broadcast %90 : f32 to vector<8x4xf32>
    %94 = arith.mulf %93, %92 : vector<8x4xf32>
    %95 = arith.addf %89, %94 : vector<8x4xf32>
    %c4_34 = arith.constant 4 : index
    %c1_35 = arith.constant 1 : index
    %96 = memref.load %arg5[%c4_34, %c1_35] : memref<8x3xf32, #tpu.memory_space<smem>>
    %97 = vector.extract_strided_slice %16 {offsets = [4, 0, 0], sizes = [1, 8, 4], strides = [1, 1, 1]} : vector<8x8x4xf32> to vector<1x8x4xf32>
    %98 = vector.shape_cast %97 : vector<1x8x4xf32> to vector<8x4xf32>
    %99 = vector.broadcast %96 : f32 to vector<8x4xf32>
    %100 = arith.mulf %99, %98 : vector<8x4xf32>
    %101 = arith.addf %95, %100 : vector<8x4xf32>
    %c5_36 = arith.constant 5 : index
    %c1_37 = arith.constant 1 : index
    %102 = memref.load %arg5[%c5_36, %c1_37] : memref<8x3xf32, #tpu.memory_space<smem>>
    %103 = vector.extract_strided_slice %16 {offsets = [5, 0, 0], sizes = [1, 8, 4], strides = [1, 1, 1]} : vector<8x8x4xf32> to vector<1x8x4xf32>
    %104 = vector.shape_cast %103 : vector<1x8x4xf32> to vector<8x4xf32>
    %105 = vector.broadcast %102 : f32 to vector<8x4xf32>
    %106 = arith.mulf %105, %104 : vector<8x4xf32>
    %107 = arith.addf %101, %106 : vector<8x4xf32>
    %c6_38 = arith.constant 6 : index
    %c1_39 = arith.constant 1 : index
    %108 = memref.load %arg5[%c6_38, %c1_39] : memref<8x3xf32, #tpu.memory_space<smem>>
    %109 = vector.extract_strided_slice %16 {offsets = [6, 0, 0], sizes = [1, 8, 4], strides = [1, 1, 1]} : vector<8x8x4xf32> to vector<1x8x4xf32>
    %110 = vector.shape_cast %109 : vector<1x8x4xf32> to vector<8x4xf32>
    %111 = vector.broadcast %108 : f32 to vector<8x4xf32>
    %112 = arith.mulf %111, %110 : vector<8x4xf32>
    %113 = arith.addf %107, %112 : vector<8x4xf32>
    %c7_40 = arith.constant 7 : index
    %c1_41 = arith.constant 1 : index
    %114 = memref.load %arg5[%c7_40, %c1_41] : memref<8x3xf32, #tpu.memory_space<smem>>
    %115 = vector.extract_strided_slice %16 {offsets = [7, 0, 0], sizes = [1, 8, 4], strides = [1, 1, 1]} : vector<8x8x4xf32> to vector<1x8x4xf32>
    %116 = vector.shape_cast %115 : vector<1x8x4xf32> to vector<8x4xf32>
    %117 = vector.broadcast %114 : f32 to vector<8x4xf32>
    %118 = arith.mulf %117, %116 : vector<8x4xf32>
    %119 = arith.addf %113, %118 : vector<8x4xf32>
    %c0_42 = arith.constant 0 : index
    %c1_43 = arith.constant 1 : index
    %c0_44 = arith.constant 0 : index
    %c0_45 = arith.constant 0 : index
    %120 = vector.load %arg7[%c0_42, %c1_43, %c0_44, %c0_45] : memref<1x3x8x4xf32, #tpu.memory_space<vmem>>, vector<1x1x8x4xf32>
    %121 = vector.shape_cast %120 : vector<1x1x8x4xf32> to vector<8x4xf32>
    %122 = vector.shape_cast %119 : vector<8x4xf32> to vector<1x1x8x4xf32>
    tpu.vector_store %arg7[%c0_42, %c1_43, %c0_44, %c0_45], %122 {strides = array<i32>} : memref<1x3x8x4xf32, #tpu.memory_space<vmem>>, vector<1x1x8x4xf32>,
    %c0_46 = arith.constant 0 : index
    %c2_47 = arith.constant 2 : index
    %123 = memref.load %arg5[%c0_46, %c2_47] : memref<8x3xf32, #tpu.memory_space<smem>>
    %124 = vector.extract_strided_slice %16 {offsets = [0, 0, 0], sizes = [1, 8, 4], strides = [1, 1, 1]} : vector<8x8x4xf32> to vector<1x8x4xf32>
    %125 = vector.shape_cast %124 : vector<1x8x4xf32> to vector<8x4xf32>
    %126 = vector.broadcast %123 : f32 to vector<8x4xf32>
    %127 = arith.mulf %126, %125 : vector<8x4xf32>
    %c2_48 = arith.constant 2 : index
    %128 = memref.load %arg6[%c2_48] : memref<3xf32, #tpu.memory_space<smem>>
    %129 = vector.broadcast %128 : f32 to vector<8x4xf32>
    %130 = arith.addf %127, %129 : vector<8x4xf32>
    %c1_49 = arith.constant 1 : index
    %c2_50 = arith.constant 2 : index
    %131 = memref.load %arg5[%c1_49, %c2_50] : memref<8x3xf32, #tpu.memory_space<smem>>
    %132 = vector.extract_strided_slice %16 {offsets = [1, 0, 0], sizes = [1, 8, 4], strides = [1, 1, 1]} : vector<8x8x4xf32> to vector<1x8x4xf32>
    %133 = vector.shape_cast %132 : vector<1x8x4xf32> to vector<8x4xf32>
    %134 = vector.broadcast %131 : f32 to vector<8x4xf32>
    %135 = arith.mulf %134, %133 : vector<8x4xf32>
    %136 = arith.addf %130, %135 : vector<8x4xf32>
    %c2_51 = arith.constant 2 : index
    %c2_52 = arith.constant 2 : index
    %137 = memref.load %arg5[%c2_51, %c2_52] : memref<8x3xf32, #tpu.memory_space<smem>>
    %138 = vector.extract_strided_slice %16 {offsets = [2, 0, 0], sizes = [1, 8, 4], strides = [1, 1, 1]} : vector<8x8x4xf32> to vector<1x8x4xf32>
    %139 = vector.shape_cast %138 : vector<1x8x4xf32> to vector<8x4xf32>
    %140 = vector.broadcast %137 : f32 to vector<8x4xf32>
    %141 = arith.mulf %140, %139 : vector<8x4xf32>
    %142 = arith.addf %136, %141 : vector<8x4xf32>
    %c3_53 = arith.constant 3 : index
    %c2_54 = arith.constant 2 : index
    %143 = memref.load %arg5[%c3_53, %c2_54] : memref<8x3xf32, #tpu.memory_space<smem>>
    %144 = vector.extract_strided_slice %16 {offsets = [3, 0, 0], sizes = [1, 8, 4], strides = [1, 1, 1]} : vector<8x8x4xf32> to vector<1x8x4xf32>
    %145 = vector.shape_cast %144 : vector<1x8x4xf32> to vector<8x4xf32>
    %146 = vector.broadcast %143 : f32 to vector<8x4xf32>
    %147 = arith.mulf %146, %145 : vector<8x4xf32>
    %148 = arith.addf %142, %147 : vector<8x4xf32>
    %c4_55 = arith.constant 4 : index
    %c2_56 = arith.constant 2 : index
    %149 = memref.load %arg5[%c4_55, %c2_56] : memref<8x3xf32, #tpu.memory_space<smem>>
    %150 = vector.extract_strided_slice %16 {offsets = [4, 0, 0], sizes = [1, 8, 4], strides = [1, 1, 1]} : vector<8x8x4xf32> to vector<1x8x4xf32>
    %151 = vector.shape_cast %150 : vector<1x8x4xf32> to vector<8x4xf32>
    %152 = vector.broadcast %149 : f32 to vector<8x4xf32>
    %153 = arith.mulf %152, %151 : vector<8x4xf32>
    %154 = arith.addf %148, %153 : vector<8x4xf32>
    %c5_57 = arith.constant 5 : index
    %c2_58 = arith.constant 2 : index
    %155 = memref.load %arg5[%c5_57, %c2_58] : memref<8x3xf32, #tpu.memory_space<smem>>
    %156 = vector.extract_strided_slice %16 {offsets = [5, 0, 0], sizes = [1, 8, 4], strides = [1, 1, 1]} : vector<8x8x4xf32> to vector<1x8x4xf32>
    %157 = vector.shape_cast %156 : vector<1x8x4xf32> to vector<8x4xf32>
    %158 = vector.broadcast %155 : f32 to vector<8x4xf32>
    %159 = arith.mulf %158, %157 : vector<8x4xf32>
    %160 = arith.addf %154, %159 : vector<8x4xf32>
    %c6_59 = arith.constant 6 : index
    %c2_60 = arith.constant 2 : index
    %161 = memref.load %arg5[%c6_59, %c2_60] : memref<8x3xf32, #tpu.memory_space<smem>>
    %162 = vector.extract_strided_slice %16 {offsets = [6, 0, 0], sizes = [1, 8, 4], strides = [1, 1, 1]} : vector<8x8x4xf32> to vector<1x8x4xf32>
    %163 = vector.shape_cast %162 : vector<1x8x4xf32> to vector<8x4xf32>
    %164 = vector.broadcast %161 : f32 to vector<8x4xf32>
    %165 = arith.mulf %164, %163 : vector<8x4xf32>
    %166 = arith.addf %160, %165 : vector<8x4xf32>
    %c7_61 = arith.constant 7 : index
    %c2_62 = arith.constant 2 : index
    %167 = memref.load %arg5[%c7_61, %c2_62] : memref<8x3xf32, #tpu.memory_space<smem>>
    %168 = vector.extract_strided_slice %16 {offsets = [7, 0, 0], sizes = [1, 8, 4], strides = [1, 1, 1]} : vector<8x8x4xf32> to vector<1x8x4xf32>
    %169 = vector.shape_cast %168 : vector<1x8x4xf32> to vector<8x4xf32>
    %170 = vector.broadcast %167 : f32 to vector<8x4xf32>
    %171 = arith.mulf %170, %169 : vector<8x4xf32>
    %172 = arith.addf %166, %171 : vector<8x4xf32>
    %c0_63 = arith.constant 0 : index
    %c2_64 = arith.constant 2 : index
    %c0_65 = arith.constant 0 : index
    %c0_66 = arith.constant 0 : index
    %173 = vector.load %arg7[%c0_63, %c2_64, %c0_65, %c0_66] : memref<1x3x8x4xf32, #tpu.memory_space<vmem>>, vector<1x1x8x4xf32>
    %174 = vector.shape_cast %173 : vector<1x1x8x4xf32> to vector<8x4xf32>
    %175 = vector.shape_cast %172 : vector<8x4xf32> to vector<1x1x8x4xf32>
    tpu.vector_store %arg7[%c0_63, %c2_64, %c0_65, %c0_66], %175 {strides = array<i32>} : memref<1x3x8x4xf32, #tpu.memory_space<vmem>>, vector<1x1x8x4xf32>,
    return
  }
  func.func @transform_0(%arg0: i32, %arg1: i32) -> (i32, i32, i32, i32) {
    %c0_i32 = arith.constant 0 : i32
    %c0_i32_0 = arith.constant 0 : i32
    %c0_i32_1 = arith.constant 0 : i32
    return %arg0, %c0_i32, %arg1, %c0_i32_0 : i32, i32, i32, i32
  }
  func.func @transform_1(%arg0: i32, %arg1: i32) -> (i32, i32) {
    %c0_i32 = arith.constant 0 : i32
    %c0_i32_0 = arith.constant 0 : i32
    %c0_i32_1 = arith.constant 0 : i32
    return %c0_i32, %c0_i32_0 : i32, i32
  }
  func.func @transform_2(%arg0: i32, %arg1: i32) -> (i32, i32) {
    %c0_i32 = arith.constant 0 : i32
    %c0_i32_0 = arith.constant 0 : i32
    %c0_i32_1 = arith.constant 0 : i32
    return %c0_i32, %c0_i32_0 : i32, i32
  }
  func.func @transform_3(%arg0: i32, %arg1: i32) -> (i32, i32) {
    %c0_i32 = arith.constant 0 : i32
    %c0_i32_0 = arith.constant 0 : i32
    %c0_i32_1 = arith.constant 0 : i32
    return %c0_i32, %c0_i32_0 : i32, i32
  }
  func.func @transform_4(%arg0: i32, %arg1: i32) -> i32 {
    %c0_i32 = arith.constant 0 : i32
    %c0_i32_0 = arith.constant 0 : i32
    return %c0_i32 : i32
  }
  func.func @transform_5(%arg0: i32, %arg1: i32) -> (i32, i32, i32, i32) {
    %c0_i32 = arith.constant 0 : i32
    %c0_i32_0 = arith.constant 0 : i32
    %c0_i32_1 = arith.constant 0 : i32
    return %arg0, %c0_i32, %arg1, %c0_i32_0 : i32, i32, i32, i32
  }
}

</mosaic_0001>

<bundles_post_ra>
// kernel: model_forward.1
= control target key start
LH: loop header
LB: loop body
LE: loop exit
PB: predicated region body
PF: predicated region fallthrough
CT: control target
= control target key end

     0   :  { %s1190_s0 = inlined_call_operand.vmem [shape: f32[2,8,8,128], index: 0, kind: input, shape index: {}]   ;;  %s1191_s1 = inlined_call_operand.vmem [shape: f32[128,4], index: 1, kind: input, shape index: {}]   ;;  %s1192_s2 = inlined_call_operand.vmem [shape: f32[1,4], index: 2, kind: input, shape index: {}]   ;;  %s1193_s3 = inlined_call_operand.vmem [shape: f32[8,3], index: 3, kind: input, shape index: {}]   ;;  %s1194_s4 = inlined_call_operand.vmem [shape: f32[3], index: 4, kind: input, shape index: {}]   ;;  %s1195_s5 = inlined_call_operand.vmem [shape: f32[2,3,8,4], index: 5, kind: output, shape index: {}]  }
   0x1   :  { %1199 = sst [smem:[#allocation8_spill]] %s1190_s0 }
   0x2   :  { %1200 = sst [smem:[#allocation9_spill]] %s1191_s1 }
   0x3   :  { %1201 = sst [smem:[#allocation10_spill]] %s1193_s3 }
   0x4   :  { %10 = vsyncpa [#allocation3], 0 }
   0x5   :  { %11 = vsyncpa [#allocation5], 0  ;;  %s956_s18 = smov 0   ;;  %s958_s19 = smov 0  }
   0x6   :  { %s960_s20 = smov 0  }
   0x7 LB: > { %s665_s21 = sadd.s32 4294967295, %s922_s20   ;;  %s29_s22 = sadd.s32 1, %s918_s19  ;;  %s922_s20 = sphi %s960_s20, %s17_s20   ;;  %s918_s19 = sphi %s958_s19, %s1211_s19   ;;  %s914_s18 = sphi %s956_s18, %s1210_s18  }
   0x8   : > { %p31_p0 = scmp.ge.s32.totalorder %s29_s22, 2  ;;  %p667_p1 = scmp.ge.s32.totalorder %s922_s20, 1 }
   0x9   : > { %p174_p2 = scmp.lt.s32.totalorder %s922_s20, 3  ;;  %p981_p4 = scmp.eq.s32.totalorder %s665_s21, 0 }
   0xa   : > { %s1213_s22 = smov (%p31_p0, %s29_s22), 0  ;;  %s1204_s3 = sld [smem:[#allocation10_spill]] }
   0xb   : > { %p977_p3 = pnand %p667_p1, %p174_p2  ;;  %s204_s30 = sshll.u32 %s1194_s4, 4  ;;  %s205_s30 = int_to_ptr.vmem [resolvable:$true] %s204_s30 }
   0xc   : > { %s1203_s24 = scalar_select %p981_p4, 1, 0 }
   0xd   : > { %s1202_s23 = scalar_select %p977_p3, 1, 0 }
   0xe   : > { %p825_p5 = pneg %p977_p3 }
  0x10   : > { %s193_s27 = sshll.u32 %s1204_s3, 4  ;;  %p995_p6 = pnand %p981_p4, %p825_p5  ;;  %s194_s27 = int_to_ptr.vmem [resolvable:$true] %s193_s27 }
  0x11   : > { %s862_s7 = scalar_lea.vmem %s194_s27, 128  ;;  %p870_p11 = scmp.lt.s32.totalorder %s194_s27, %s194_s27 }
  0x12   : > { %p863_p7 = scmp.ne.s32.totalorder %s194_s27, %s862_s7  ;;  %p864_p8 = pneg %p995_p6 }
  0x13   : > { %p871_p12 = scmp.lt.s32.totalorder %s862_s7, %s862_s7 }
  0x14   : > { %p865_p9 = pnand %p864_p8, %p863_p7 }
  0x15   : > { %p872_p13 = por %p871_p12, %p870_p11 }
  0x16   : > { %p866_p10 = pneg %p865_p9 }
  0x18   : > { %p873_p0 = pnand %p872_p13, %p866_p10 }
  0x1a   : > { %876 = shalt.err (!%p873_p0)
}
  0x1b   : > { %s924_s8 = smov [#allocation2]   ;;  %s877_s9 = scalar_lea.vmem %s205_s30, 16 }
  0x1c   : > { %828 = dma.vmem_to_smem (!%p995_p6), %s194_s27, 128, %s924_s8, [#allocation3]  }
  0x1d   : > { %p878_p1 = scmp.ne.s32.totalorder %s205_s30, %s877_s9  ;;  %p885_p4 = scmp.lt.s32.totalorder %s205_s30, %s205_s30 }
  0x1e   : > { %p886_p3 = scmp.lt.s32.totalorder %s877_s9, %s877_s9 }
  0x1f   : > { %p880_p2 = pnand %p878_p1, %p864_p8 }
  0x20   : > { %p887_p7 = por %p886_p3, %p885_p4 }
  0x21   : > { %p881_p5 = pneg %p880_p2 }
  0x23   : > { %p888_p9 = pnand %p887_p7, %p881_p5 }
  0x25   : > { %891 = shalt.err (!%p888_p9)
}
  0x26   : > { %s925_s10 = smov [#allocation4]   ;;  %p1206_p10 = scmp.ne.s32.totalorder %s1202_s23, 0 }
  0x27   : > { %831 = dma.vmem_to_smem (!%p995_p6), %s205_s30, 16, %s925_s10, [#allocation5]  }
  0x28   : > { %228 = sbr.rel (%p1206_p10) target bundleno = 310 (0x136), region = 40  ;;  %p1207_p11 = scmp.ne.s32.totalorder (!%p1206_p10), %s1203_s24, 0 }
  0x2d   : > { %905 = dma.done.wait (%p1207_p11), [#allocation3], 128  }
  0x2e   : > { %907 = vsyncadd (%p1207_p11), [#allocation3], 4294967168 }
  0x2f   : > { %909 = dma.done.wait (%p1207_p11), [#allocation5], 16  }
  0x30   : > { %911 = vsyncadd (%p1207_p11), [#allocation5], 4294967280 }
  0x31   : > { %238 = sfence }
  0x32   : > { %s1208_s1 = sld [smem:[#allocation9_spill]]  ;;  %p267_p3 = scmp.lt.s32.totalorder %s914_s18, 1  ;;  %v1124_v24 = vld [vmem:[%s1192_s2] ss:$0 sm:$0xff]  ;;  %vm485_vm0 = vcmask 31744  }
  0x33   : > { %s1209_s0 = sld [smem:[#allocation8_spill]] }
  0x34   : > { %s1215_s18 = smov (!%p267_p3, %s914_s18), 1  ;;  %s1081_s30 = sld [smem:[#allocation2 + $0x80]] }
  0x35   : > { %s715_s12 = sshll.u32 %s1215_s18, 6  ;;  %s1083_s6 = sld [smem:[#allocation2 + $0x81]] }
  0x36   : > { %s1085_s7 = sld [smem:[#allocation2 + $0x82]] }
  0x37   : > { %s1087_s8 = sld [smem:[#allocation2]] }
  0x38   : > { %v306_v0 = vld [vmem:[%s1208_s1 + $0x78] sm:$0xff]  ;;  %v305_v1 = vld [vmem:[%s1208_s1 + $0x70] sm:$0xff]  ;;  %v304_v2 = vld [vmem:[%s1208_s1 + $0x68] sm:$0xff]  ;;  %s1089_s9 = sld [smem:[#allocation4]] }
  0x39   : > { %740 = vmatprep.subr.mxu0 %v306_v0  ;;  %784 = vmatprep.subr.mxu1 %v306_v0  ;;  %v303_v3 = vld [vmem:[%s1208_s1 + $0x60] sm:$0xff]  ;;  %v302_v4 = vld [vmem:[%s1208_s1 + $0x58] sm:$0xff]  ;;  %v301_v5 = vld [vmem:[%s1208_s1 + $0x50] sm:$0xff]  ;;  %s1059_s17 = scalar_lea.vmem %s1209_s0, %s715_s12  ;;  %s1091_s10 = sld [smem:[#allocation2 + $0x1]] }
  0x3a   : > { %741 = vmatpush3.msra.mxu0 %v306_v0  ;;  %800 = vmatpush3.msra.mxu1 %v306_v0  ;;  %v300_v6 = vld [vmem:[%s1208_s1 + $0x48] sm:$0xff]  ;;  %v299_v7 = vld [vmem:[%s1208_s1 + $0x40] sm:$0xff]  ;;  %v298_v8 = vld [vmem:[%s1208_s1 + $0x38] sm:$0xff]  ;;  %s1093_s11 = sld [smem:[#allocation4 + $0x1]]  ;;  %v458_v26 = vstv %s1081_s30 }
  0x3b   : > { %742 = vmatprep.subr.mxu0 %v305_v1  ;;  %785 = vmatprep.subr.mxu1 %v305_v1  ;;  %v297_v9 = vld [vmem:[%s1208_s1 + $0x30] sm:$0xff]  ;;  %v296_v10 = vld [vmem:[%s1208_s1 + $0x28] sm:$0xff]  ;;  %v295_v11 = vld [vmem:[%s1208_s1 + $0x20] sm:$0xff]  ;;  %s1095_s12 = sld [smem:[#allocation2 + $0x2]]  ;;  %v494_v27 = vstv %s1083_s6 }
  0x3c   : > { %743 = vmatpush3.msra.mxu0 %v305_v1  ;;  %801 = vmatpush3.msra.mxu1 %v305_v1  ;;  %v294_v12 = vld [vmem:[%s1208_s1 + $0x18] sm:$0xff]  ;;  %v293_v13 = vld [vmem:[%s1208_s1 + $0x10] sm:$0xff]  ;;  %v283_v14 = vld [vmem:[%s1059_s17] sm:$0xff]  ;;  %s1097_s13 = sld [smem:[#allocation4 + $0x2]]  ;;  %v530_v28 = vstv %s1085_s7 }
  0x3d   : > { %744 = vmatprep.subr.mxu0 %v304_v2  ;;  %786 = vmatprep.subr.mxu1 %v304_v2  ;;  %v292_v15 = vld [vmem:[%s1208_s1 + $0x8] sm:$0xff]  ;;  %v291_v16 = vld [vmem:[%s1208_s1] sm:$0xff]  ;;  %v285_v18 = vld [vmem:[%s1059_s17 + $0x10] sm:$0xff]  ;;  %s1099_s14 = sld [smem:[#allocation2 + $0x180]]  ;;  %v452_v30 = vstv %s1087_s8  ;;  %s816_s8 = smul.u32 24, %s1215_s18 }
  0x3e   : > { %745 = vmatpush3.msra.mxu0 %v304_v2  ;;  %802 = vmatpush3.msra.mxu1 %v304_v2  ;;  %v284_v17 = vld [vmem:[%s1059_s17 + $0x8] sm:$0xff]  ;;  %v287_v19 = vld [vmem:[%s1059_s17 + $0x20] sm:$0xff]  ;;  %v289_v21 = vld [vmem:[%s1059_s17 + $0x30] sm:$0xff]  ;;  %s1101_s15 = sld [smem:[#allocation2 + $0x181]]  ;;  %v455_v31 = vstv %s1089_s9 }
  0x3f   : > { %746 = vmatprep.subr.mxu0 %v303_v3  ;;  %787 = vmatprep.subr.mxu1 %v303_v3  ;;  %v288_v20 = vld [vmem:[%s1059_s17 + $0x28] sm:$0xff]  ;;  %v286_v22 = vld [vmem:[%s1059_s17 + $0x18] sm:$0xff]  ;;  %s1103_s16 = sld [smem:[#allocation2 + $0x182]]  ;;  %v488_v32 = vstv %s1091_s10 }
  0x40   : > { %747 = vmatpush3.msra.mxu0 %v303_v3  ;;  %803 = vmatpush3.msra.mxu1 %v303_v3  ;;  %v290_v23 = vld [vmem:[%s1059_s17 + $0x38] sm:$0xff]  ;;  %s1105_s17 = sld [smem:[#allocation2 + $0x100]]  ;;  %v491_v34 = vstv %s1093_s11  ;;  %s282_s11 = scalar_lea.vmem %s1195_s5, %s816_s8 }
  0x41   : > { %748 = vmatprep.subr.mxu0 %v302_v4  ;;  %788 = vmatprep.subr.mxu1 %v302_v4  ;;  %s1107_s21 = sld [smem:[#allocation2 + $0x101]]  ;;  %v524_v35 = vstv %s1095_s12 }
  0x42   : > { %749 = vmatpush3.msra.mxu0 %v302_v4  ;;  %804 = vmatpush3.msra.mxu1 %v302_v4  ;;  %s1109_s23 = sld [smem:[#allocation2 + $0x102]]  ;;  %v527_v36 = vstv %s1097_s13 }
  0x43   : > { %750 = vmatprep.subr.mxu0 %v301_v5  ;;  %789 = vmatprep.subr.mxu1 %v301_v5  ;;  %s1111_s24 = sld [smem:[#allocation2 + $0x280]]  ;;  %v466_v37 = vstv %s1099_s14 }
  0x44   : > { %751 = vmatpush3.msra.mxu0 %v301_v5  ;;  %805 = vmatpush3.msra.mxu1 %v301_v5  ;;  %s1113_s25 = sld [smem:[#allocation2 + $0x281]]  ;;  %v502_v41 = vstv %s1101_s15 }
  0x45   : > { %752 = vmatprep.subr.mxu0 %v300_v6  ;;  %790 = vmatprep.subr.mxu1 %v300_v6  ;;  %s1115_s26 = sld [smem:[#allocation2 + $0x282]]  ;;  %v538_v42 = vstv %s1103_s16 }
  0x46   : > { %753 = vmatpush3.msra.mxu0 %v300_v6  ;;  %806 = vmatpush3.msra.mxu1 %v300_v6  ;;  %s1117_s27 = sld [smem:[#allocation2 + $0x200]]  ;;  %v462_v44 = vstv %s1105_s17 }
  0x47   : > { %754 = vmatprep.subr.mxu0 %v299_v7  ;;  %791 = vmatprep.subr.mxu1 %v299_v7  ;;  %s1119_s28 = sld [smem:[#allocation2 + $0x201]]  ;;  %v498_v45 = vstv %s1107_s21 }
  0x48   : > { %755 = vmatpush3.msra.mxu0 %v299_v7  ;;  %807 = vmatpush3.msra.mxu1 %v299_v7  ;;  %s1126_s1 = sld [smem:[#allocation2 + $0x202]]  ;;  %v534_v46 = vstv %s1109_s23 }
  0x49   : > { %756 = vmatprep.subr.mxu0 %v298_v8  ;;  %792 = vmatprep.subr.mxu1 %v298_v8  ;;  %s1128_s3 = sld [smem:[#allocation2 + $0x380]]  ;;  %v474_v52 = vstv %s1111_s24 }
  0x4a   : > { %757 = vmatpush3.msra.mxu0 %v298_v8  ;;  %808 = vmatpush3.msra.mxu1 %v298_v8  ;;  %s1141_s0 = sld [smem:[#allocation2 + $0x381]]  ;;  %v510_v54 = vstv %s1113_s25 }
  0x4b   : > { %758 = vmatprep.subr.mxu0 %v297_v9  ;;  %793 = vmatprep.subr.mxu1 %v297_v9  ;;  %s1146_s30 = sld [smem:[#allocation2 + $0x300]]  ;;  %v546_v55 = vstv %s1115_s26 }
  0x4c   : > { %759 = vmatpush3.msra.mxu0 %v297_v9  ;;  %809 = vmatpush3.msra.mxu1 %v297_v9  ;;  %s1152_s6 = sld [smem:[#allocation2 + $0x301]]  ;;  %v470_v57 = vstv %s1117_s27 }
  0x4d   : > { %760 = vmatprep.subr.mxu0 %v296_v10  ;;  %794 = vmatprep.subr.mxu1 %v296_v10  ;;  %v506_v59 = vstv %s1119_s28  ;;  %s1164_s7 = sld [smem:[#allocation2 + $0x302]] }
  0x4e   : > { %761 = vmatpush3.msra.mxu0 %v296_v10  ;;  %810 = vmatpush3.msra.mxu1 %v296_v10  ;;  %v542_v60 = vstv %s1126_s1  ;;  %s1170_s1 = sld [smem:[#allocation2 + $0x382]] }
  0x4f   : > { %762 = vmatprep.subr.mxu0 %v295_v11  ;;  %795 = vmatprep.subr.mxu1 %v295_v11  ;;  %v482_v61 = vstv %s1128_s3 }
  0x50   : > { %763 = vmatpush3.msra.mxu0 %v295_v11  ;;  %811 = vmatpush3.msra.mxu1 %v295_v11 }
  0x51   : > { %764 = vmatprep.subr.mxu0 %v294_v12  ;;  %796 = vmatprep.subr.mxu1 %v294_v12 }
  0x52   : > { %765 = vmatpush3.msra.mxu0 %v294_v12  ;;  %812 = vmatpush3.msra.mxu1 %v294_v12 }
  0x53   : > { %766 = vmatprep.subr.mxu0 %v293_v13  ;;  %772 = vmatprep.mubr.f32.mxu0 %v283_v14 }
  0x54   : > { %767 = vmatpush3.msra.mxu0 %v293_v13  ;;  %797 = vmatprep.subr.mxu1 %v293_v13 }
  0x55   : > { %768 = vmatprep.subr.mxu0 %v292_v15  ;;  %813 = vmatpush3.msra.mxu1 %v293_v13 }
  0x56   : > { %769 = vmatpush3.msra.mxu0 %v292_v15  ;;  %798 = vmatprep.subr.mxu1 %v292_v15 }
  0x57   : > { %770 = vmatprep.subr.mxu0 %v291_v16  ;;  %814 = vmatpush3.msra.mxu1 %v292_v15 }
  0x58   : > { %771 = vmatpush3.msra.mxu0 %v291_v16  ;;  %799 = vmatprep.subr.mxu1 %v291_v16 }
  0x59   : > { %773 = vmatmul.mubr.f32.vlgmr.msra.gmra.mxu0 %v284_v17  ;;  %815 = vmatpush3.msra.mxu1 %v291_v16  ;;  %v518_v16 = vstv %s1141_s0 }
  0x5a   : > { %775 = vmatprep.mubr.f32.mxu0 %v285_v18  ;;  %778 = vmatprep.mubr.f32.mxu1 %v287_v19  ;;  %v478_v18 = vstv %s1146_s30  ;;  %v514_v19 = vstv %s1152_s6 }
  0x5b   : > { %779 = vmatmul.mubr.f32.vlgmr.msra.gmra.mxu1 %v288_v20 }
  0x5c   : > { %781 = vmatprep.mubr.f32.mxu1 %v289_v21 }
  0x5d   : > { %776 = vmatmul.mubr.f32.gmra.mxu0 %v286_v22 }
  0x5f   : > { %782 = vmatmul.mubr.f32.gmra.mxu1 %v290_v23 }
 0x119   : > { %v774_v25 = vpop.f32.mrf.mxu0 }
 0x11a   : > { %v386_v29 = vadd.f32 %v774_v25, %v1124_v24 }
 0x11b   : > { %v380_v33 = vpop.f32.mrf.mxu0  ;;  %v780_v38 = vpop.f32.mrf.mxu1 }
 0x11c   : > { %v420_v39 = vmax.f32 %v386_v29, 5.191708  ;;  %v381_v40 = vadd.f32 %v1124_v24, %v380_v33  ;;  %v406_v47 = vadd.f32 %v780_v38, %v1124_v24 }
 0x11d   : > { %v777_v43 = vpop.f32.mrf.mxu0  ;;  %v400_v48 = vpop.f32.mrf.mxu1 }
 0x11e   : > { %v428_v49 = vmin.f32 %v420_v39, -5.181125  ;;  %v419_v50 = vmax.f32 %v381_v40, 5.191708  ;;  %v396_v51 = vadd.f32 %v777_v43, %v1124_v24  ;;  %v401_v56 = vadd.f32 %v1124_v24, %v400_v48 }
 0x11f   : > { %v390_v53 = vpop.f32.mrf.mxu0  ;;  %v424_v1 = vmax.f32 %v406_v47, 5.191708  ;;  %v783_v2 = vpop.f32.mrf.mxu1  ;;  %v550_v43 = vstv %s1164_s7 }
 0x120   : > { %v427_v58 = vmin.f32 %v419_v50, -5.181125  ;;  %v459_v62 = vmul.f32 %v458_v26, %v428_v49  ;;  %v422_v63 = vmax.f32 %v396_v51, 5.191708  ;;  %v391_v0 = vadd.f32 %v1124_v24, %v390_v53 }
 0x121   : > { %v423_v6 = vmax.f32 %v401_v56, 5.191708  ;;  %v495_v7 = vmul.f32 %v494_v27, %v428_v49  ;;  %v531_v8 = vmul.f32 %v530_v28, %v428_v49  ;;  %v416_v10 = vadd.f32 %v783_v2, %v1124_v24  ;;  %v410_v17 = vpop.f32.mrf.mxu1 }
 0x122   : > { %v453_v3 = vmul.f32 %v452_v30, %v427_v58  ;;  %v489_v4 = vmul.f32 %v488_v32, %v427_v58  ;;  %v525_v5 = vmul.f32 %v524_v35, %v427_v58  ;;  %v421_v9 = vmax.f32 %v391_v0, 5.191708 }
 0x123   : > { %v430_v14 = vmin.f32 %v422_v63, -5.181125  ;;  %v431_v23 = vmin.f32 %v423_v6, -5.181125  ;;  %v432_v28 = vmin.f32 %v424_v1, -5.181125  ;;  %v411_v32 = vadd.f32 %v1124_v24, %v410_v17 }
 0x124   : > { %v456_v11 = vadd.f32 %v455_v31, %v453_v3  ;;  %v492_v12 = vadd.f32 %v491_v34, %v489_v4  ;;  %v528_v13 = vadd.f32 %v527_v36, %v525_v5  ;;  %v429_v15 = vmin.f32 %v421_v9, -5.181125 }
 0x125   : > { %v467_v29 = vmul.f32 %v466_v37, %v430_v14  ;;  %v503_v30 = vmul.f32 %v502_v41, %v430_v14  ;;  %v426_v31 = vmax.f32 %v416_v10, 5.191708  ;;  %v539_v33 = vmul.f32 %v538_v42, %v430_v14 }
 0x126   : > { %v460_v20 = vadd.f32 %v459_v62, %v456_v11  ;;  %v496_v21 = vadd.f32 %v495_v7, %v492_v12  ;;  %v532_v22 = vadd.f32 %v531_v8, %v528_v13  ;;  %v463_v25 = vmul.f32 %v462_v44, %v429_v15 }
 0x127   : > { %v499_v26 = vmul.f32 %v498_v45, %v429_v15  ;;  %v535_v27 = vmul.f32 %v534_v46, %v429_v15  ;;  %v471_v38 = vmul.f32 %v470_v57, %v431_v23  ;;  %v507_v39 = vmul.f32 %v506_v59, %v431_v23 }
 0x128   : > { %v464_v34 = vadd.f32 %v463_v25, %v460_v20  ;;  %v425_v40 = vmax.f32 %v411_v32, 5.191708  ;;  %v543_v46 = vmul.f32 %v542_v60, %v431_v23  ;;  %v475_v48 = vmul.f32 %v474_v52, %v432_v28 }
 0x129   : > { %v500_v35 = vadd.f32 %v499_v26, %v496_v21  ;;  %v536_v36 = vadd.f32 %v535_v27, %v532_v22  ;;  %v511_v37 = vmul.f32 %v510_v54, %v432_v28  ;;  %v434_v41 = vmin.f32 %v426_v31, -5.181125 }
 0x12a   : > { %v468_v47 = vadd.f32 %v467_v29, %v464_v34  ;;  %v433_v49 = vmin.f32 %v425_v40, -5.181125  ;;  %v547_v24 = vmul.f32 %v546_v55, %v432_v28  ;;  %v554_v53 = vstv %s1170_s1 }
 0x12b   : > { %v504_v44 = vadd.f32 %v503_v30, %v500_v35  ;;  %v540_v45 = vadd.f32 %v539_v33, %v536_v36  ;;  %v483_v0 = vmul.f32 %v482_v61, %v434_v41  ;;  %v519_v60 = vmul.f32 %v518_v16, %v434_v41 }
 0x12c   : > { %v472_v42 = vadd.f32 %v471_v38, %v468_v47  ;;  %v479_v56 = vmul.f32 %v478_v18, %v433_v49  ;;  %v515_v57 = vmul.f32 %v514_v19, %v433_v49  ;;  %v551_v63 = vmul.f32 %v550_v43, %v433_v49 }
 0x12d   : > { %v508_v50 = vadd.f32 %v507_v39, %v504_v44  ;;  %v544_v51 = vadd.f32 %v543_v46, %v540_v45  ;;  %v555_v52 = vmul.f32 %v554_v53, %v434_v41 }
 0x12e   : > { %v476_v58 = vadd.f32 %v475_v48, %v472_v42 }
 0x12f   : > { %v512_v59 = vadd.f32 %v511_v37, %v508_v50  ;;  %v548_v62 = vadd.f32 %v547_v24, %v544_v51 }
 0x130   : > { %v480_v1 = vadd.f32 %v479_v56, %v476_v58 }
 0x131   : > { %v516_v54 = vadd.f32 %v515_v57, %v512_v59  ;;  %v552_v2 = vadd.f32 %v551_v63, %v548_v62 }
 0x132   : > { %v484_v55 = vadd.f32 %v483_v0, %v480_v1 }
 0x133   : > { %v520_v3 = vadd.f32 %v519_v60, %v516_v54  ;;  %v556_v4 = vadd.f32 %v555_v52, %v552_v2 }
 0x134   : > { %486 = vst.msk [vmem:[%s282_s11] sm:$0xff] %vm485_vm0, %v484_v55 }
 0x135   : > { %702 = vst.msk [vmem:[%s282_s11 + $0x8] sm:$0xff] %vm485_vm0, %v520_v3  ;;  %712 = vst.msk [vmem:[%s282_s11 + $0x10] sm:$0xff] %vm485_vm0, %v556_v4 }
 0x136 PF: > { %s17_s20 = sadd.s32 1, %s922_s20   ;;  %s1210_s18 = smov %s918_s19 }
 0x137   : > { %p14_p4 = scmp.ge.s32.totalorder %s17_s20, 4   ;;  %s1211_s19 = smov %s1213_s22 }
 0x139   :  { %16 = sbr.rel (!%p14_p4) target bundleno = 7 (0x7), region = 81 }
 0x13e   :  { %586 = vsyncpa [#allocation3], 1 }
 0x13f   :  { %588 = vsyncpa [#allocation3 + $0x1], 1 }
 0x140   :  { %589 = vsyncpa [#allocation5], 1 }

</bundles_post_ra>
